<compile_context>
chip_gen: v6e
topology: v6e:2x2x1
jax: 0.10.0
libtpu: 0.0.40
codegen_flags: <defaults>
</compile_context>

<pallas_src>
import jax
import jax.numpy as jnp
from jax import lax
from jax.experimental import pallas as pl
from jax.experimental.pallas import tpu as pltpu

_LANE = 128   # lane-dense padding width for the hidden (E) dim
_LPAD = 8     # sublane-padded label dim (logits are computed transposed)


def _round_up(x, m):
    return ((x + m - 1) // m) * m


def _kernel(rsum_ref, w1_ref, b1_ref, w2_ref, b2_ref, out_ref):
    # rsum already holds rowsum_word + rowsum_ng2 + rowsum_ng3 (summed in XLA);
    # the 1/(3E) mean factor is folded into w1.  dropout(p=0.1) -> eval identity.
    h = jnp.dot(rsum_ref[...], w1_ref[...],
                preferred_element_type=jnp.float32) + b1_ref[...]
    h = jnp.maximum(h, 0.0)                      # (TB, 128); cols >= E are exactly zero

    # linear2, transposed: logits^T = w2 (8, 128) contracted with h (TB, 128) on the
    # hidden dim -> (8, TB).  Lane axis is batch-sized and 128-dense (unmasked stores).
    out_ref[...] = lax.dot_general(
        w2_ref[...], h,
        dimension_numbers=(((1,), (1,)), ((), ())),
        preferred_element_type=jnp.float32) + b2_ref[...]


def prepare_params(params):
    """One-time parameter prep: row-sum tables + pre-transposed, lane-padded weights."""
    emb_w = params["emb_word"]
    E = emb_w.shape[1]
    L = params["w2"].shape[0]
    S = 3 * E
    inv = 1.0 / (3.0 * E)   # mean over the concatenated last dim of size 3E

    # linear1: fold the mean's 1/(3E) into the weight (bias untouched), pad to 128 lanes.
    w1t = (params["w1"].T * inv).astype(jnp.float32)                     # (3E, E)
    w1p = jnp.zeros((S, _LANE), jnp.float32).at[:, :E].set(w1t)
    b1p = jnp.zeros((1, _LANE), jnp.float32).at[0, :E].set(
        params["b1"].astype(jnp.float32))

    # linear2 kept row-major (L, E), padded to (8, 128): kernel computes logits^T.
    w2p = jnp.zeros((_LPAD, _LANE), jnp.float32).at[:L, :E].set(
        params["w2"].astype(jnp.float32))
    b2p = jnp.zeros((_LPAD, 1), jnp.float32).at[:L, 0].set(
        params["b2"].astype(jnp.float32))

    return {
        "rowsum_word": emb_w.sum(axis=-1).astype(jnp.float32),              # (V,)
        "rowsum_ng2": params["emb_ng2"].sum(axis=-1).astype(jnp.float32),   # (250499,)
        "rowsum_ng3": params["emb_ng3"].sum(axis=-1).astype(jnp.float32),   # (250499,)
        "w1p": w1p, "b1p": b1p, "w2p": w2p, "b2p": b2p,
        "emb_dim": E, "num_labels": L,
    }


def _choose_batch_tile(B, batch_tile):
    """Pick (TB, num_blocks). TB multiple of 128 when tiled; >=2 blocks for big batches."""
    Bp8 = _round_up(B, 8)
    if Bp8 <= 256:
        return Bp8, 1                       # single block == full (padded) batch dim
    cap = max(128, _round_up(batch_tile, 128))
    two_way = _round_up(pl.cdiv(Bp8, 2), 128)   # target >= 2 blocks (v7x megacore)
    TB = min(cap, two_way)
    return TB, pl.cdiv(Bp8, TB)


def fasttext_forward(prep, input_ids, input_ids_gram2, input_ids_gram3,
                     input_mask, labels, *, batch_tile=2048):
    # input_mask / labels are unused by the reference forward (it only returns logits).
    del input_mask, labels

    E = prep["emb_dim"]
    L = prep["num_labels"]
    B, S = input_ids.shape
    assert S == 3 * E, (
        f"Fasttext forward requires seq_len == 3*embedding_size "
        f"(mean(dim=-1) then linear1(3E->E)); got S={S}, E={E}")

    TB, num_blocks = _choose_batch_tile(B, batch_tile)
    Bp = TB * num_blocks

    if Bp != B:
        # Pad the int32 id arrays; the pad fuses into the gather fusion below so there is
        # no extra HBM pass over the f32 activation.
        pad = ((0, Bp - B), (0, 0))
        input_ids = jnp.pad(input_ids, pad)
        input_ids_gram2 = jnp.pad(input_ids_gram2, pad)
        input_ids_gram3 = jnp.pad(input_ids_gram3, pad)

    # cat(...).mean(-1) == (rowsum_word[ids] + rowsum_ng2[ids2] + rowsum_ng3[ids3]) / (3E).
    # Three 1-D gathers + adds fuse into one XLA pass writing ONE (Bp, S) activation.
    # TODO(synk): per-element DMA gather of the 250499-entry rowsum tables is too
    # fine-grained to move in-kernel profitably; left to XLA's fused gather.
    rsum = (jnp.take(prep["rowsum_word"], input_ids, axis=0)
            + jnp.take(prep["rowsum_ng2"], input_ids_gram2, axis=0)
            + jnp.take(prep["rowsum_ng3"], input_ids_gram3, axis=0))     # (Bp, S) f32

    act_spec = pl.BlockSpec((TB, S), lambda b: (b, 0))

    def w_spec(arr):
        # Whole (tiny) weight resident across the batch grid.
        return pl.BlockSpec(arr.shape, lambda b: (0, 0))

    logits_t = pl.pallas_call(
        _kernel,
        out_shape=jax.ShapeDtypeStruct((_LPAD, Bp), jnp.float32),
        grid=(num_blocks,),
        in_specs=[act_spec,
                  w_spec(prep["w1p"]), w_spec(prep["b1p"]),
                  w_spec(prep["w2p"]), w_spec(prep["b2p"])],
        out_specs=pl.BlockSpec((_LPAD, TB), lambda b: (0, b)),
        compiler_params=pltpu.CompilerParams(
            dimension_semantics=("parallel",)),
    )(rsum, prep["w1p"], prep["b1p"], prep["w2p"], prep["b2p"])

    return logits_t[:L, :B].T


def _reference_forward(params, input_ids, ids2, ids3):
    """Pure-JAX reference matching the PyTorch module (eval mode)."""
    ew = jnp.take(params["emb_word"], input_ids, axis=0)
    e2 = jnp.take(params["emb_ng2"], ids2, axis=0)
    e3 = jnp.take(params["emb_ng3"], ids3, axis=0)
    out = jnp.concatenate([ew, e2, e3], axis=-1)
    out = out.mean(axis=-1)
    out = out @ params["w1"].T + params["b1"]
    out = jnp.maximum(out, 0.0)
    out = out @ params["w2"].T + params["b2"]
    return out


if __name__ == "__main__":
    # Small, shape-consistent config. The module's forward requires
    # seq_len == 3 * embedding_size (mean(dim=-1) then linear1(3E -> E)).
    vocab_size = 200
    n_gram_vocab = 250499      # hardcoded in the module's __init__
    embedding_size = 16
    seq_len = 3 * embedding_size   # = 48
    num_labels = 2

    key = jax.random.PRNGKey(0)
    (k_emb, k_n2, k_n3, k_w1, k_b1, k_w2, k_b2,
     k_i1, k_i2, k_i3) = jax.random.split(key, 10)

    params = {
        "emb_word": 0.02 * jax.random.normal(
            k_emb, (vocab_size, embedding_size), jnp.float32),
        "emb_ng2": 0.02 * jax.random.normal(
            k_n2, (n_gram_vocab, embedding_size), jnp.float32),
        "emb_ng3": 0.02 * jax.random.normal(
            k_n3, (n_gram_vocab, embedding_size), jnp.float32),
        "w1": 0.1 * jax.random.normal(
            k_w1, (embedding_size, 3 * embedding_size), jnp.float32),
        "b1": 0.1 * jax.random.normal(k_b1, (embedding_size,), jnp.float32),
        "w2": 0.1 * jax.random.normal(
            k_w2, (num_labels, embedding_size), jnp.float32),
        "b2": 0.1 * jax.random.normal(k_b2, (num_labels,), jnp.float32),
    }

    # One-time param prep (row-sum tables, pre-transposed / scaled / lane-padded weights).
    prep = prepare_params(params)

    def run_case(batch, kids):
        ki1, ki2, ki3 = kids
        ids = jax.random.randint(ki1, (batch, seq_len), 0, vocab_size)
        ids2 = jax.random.randint(ki2, (batch, seq_len), 0, n_gram_vocab)
        ids3 = jax.random.randint(ki3, (batch, seq_len), 0, n_gram_vocab)
        mask = jnp.ones((batch, seq_len), dtype=jnp.int32)
        lbls = jnp.zeros((batch,), dtype=jnp.int32)

        logits = fasttext_forward(prep, ids, ids2, ids3, mask, lbls)
        logits = jax.block_until_ready(logits)

        ref = _reference_forward(params, ids, ids2, ids3)
        assert logits.shape == (batch, num_labels), logits.shape
        assert jnp.allclose(logits, ref, atol=1e-5, rtol=1e-5), (logits, ref)

    # Small single-block case (batch=2) and a multi-block case exercising the tiled,
    # 128-multiple-TB / two-TensorCore path.
    run_case(2, (k_i1, k_i2, k_i3))
    run_case(300, tuple(jax.random.split(k_i1, 3)))

    print("KERNEL_OK")
</pallas_src>

<mosaic_0001>
module attributes {stable_mosaic.version = 11 : i64} {
  func.func @_kernel(%arg0: i32, %arg1: memref<8x48xf32, #tpu.memory_space<vmem>>, %arg2: memref<48x128xf32, #tpu.memory_space<vmem>>, %arg3: memref<1x128xf32, #tpu.memory_space<vmem>>, %arg4: memref<8x128xf32, #tpu.memory_space<vmem>>, %arg5: memref<8x1xf32, #tpu.memory_space<vmem>>, %arg6: memref<8x8xf32, #tpu.memory_space<vmem>>) attributes {dimension_semantics = [#tpu.dimension_semantics<parallel>], iteration_bounds = array<i64: 1>, scalar_prefetch = 0 : i64, scratch_operands = 0 : i64, tpu.core_type = #tpu.core_type<tc>, window_params = [{transform_indices = @transform_0, window_bounds = array<i64: 8, 48>}, {pipeline_mode = #tpu.pipeline_mode<synchronous>, transform_indices = @transform_1, window_bounds = array<i64: 48, 128>}, {pipeline_mode = #tpu.pipeline_mode<synchronous>, transform_indices = @transform_2, window_bounds = array<i64: 1, 128>}, {pipeline_mode = #tpu.pipeline_mode<synchronous>, transform_indices = @transform_3, window_bounds = array<i64: 8, 128>}, {pipeline_mode = #tpu.pipeline_mode<synchronous>, transform_indices = @transform_4, window_bounds = array<i64: 8, 1>}, {transform_indices = @transform_5, window_bounds = array<i64: 8, 8>}]} {
    %c0 = arith.constant 0 : index
    %c0_0 = arith.constant 0 : index
    %0 = vector.load %arg1[%c0, %c0_0] : memref<8x48xf32, #tpu.memory_space<vmem>>, vector<8x48xf32>
    %c0_1 = arith.constant 0 : index
    %c0_2 = arith.constant 0 : index
    %1 = vector.load %arg2[%c0_1, %c0_2] : memref<48x128xf32, #tpu.memory_space<vmem>>, vector<48x128xf32>
    %cst = arith.constant dense<0.000000e+00> : vector<8x128xf32>
    %2 = tpu.matmul %0, %1, %cst {dimension_numbers = #tpu.dot_dimension_numbers<[1], [0], [0], [1], [0, 0, 1, 1], [], []>} : vector<8x48xf32>, vector<48x128xf32>, vector<8x128xf32> -> vector<8x128xf32>
    %c0_3 = arith.constant 0 : index
    %c0_4 = arith.constant 0 : index
    %3 = vector.load %arg3[%c0_3, %c0_4] : memref<1x128xf32, #tpu.memory_space<vmem>>, vector<1x128xf32>
    %4 = vector.broadcast %3 : vector<1x128xf32> to vector<8x128xf32>
    %5 = arith.addf %2, %4 : vector<8x128xf32>
    %cst_5 = arith.constant 0.000000e+00 : f32
    %6 = vector.broadcast %cst_5 : f32 to vector<8x128xf32>
    %7 = arith.maximumf %5, %6 : vector<8x128xf32>
    %c0_6 = arith.constant 0 : index
    %c0_7 = arith.constant 0 : index
    %8 = vector.load %arg4[%c0_6, %c0_7] : memref<8x128xf32, #tpu.memory_space<vmem>>, vector<8x128xf32>
    %cst_8 = arith.constant dense<0.000000e+00> : vector<8x8xf32>
    %9 = tpu.matmul %8, %7, %cst_8 {dimension_numbers = #tpu.dot_dimension_numbers<[1], [1], [0], [0], [0, 0, 1, 0], [], []>} : vector<8x128xf32>, vector<8x128xf32>, vector<8x8xf32> -> vector<8x8xf32>
    %c0_9 = arith.constant 0 : index
    %c0_10 = arith.constant 0 : index
    %10 = vector.load %arg5[%c0_9, %c0_10] : memref<8x1xf32, #tpu.memory_space<vmem>>, vector<8x1xf32>
    %11 = vector.broadcast %10 : vector<8x1xf32> to vector<8x8xf32>
    %12 = arith.addf %9, %11 : vector<8x8xf32>
    %c0_11 = arith.constant 0 : index
    %c0_12 = arith.constant 0 : index
    %13 = vector.load %arg6[%c0_11, %c0_12] : memref<8x8xf32, #tpu.memory_space<vmem>>, vector<8x8xf32>
    tpu.vector_store %arg6[%c0_11, %c0_12], %12 {strides = array<i32>} : memref<8x8xf32, #tpu.memory_space<vmem>>, vector<8x8xf32>,
    return
  }
  func.func @transform_0(%arg0: i32) -> (i32, i32) {
    %c0_i32 = arith.constant 0 : i32
    %c0_i32_0 = arith.constant 0 : i32
    return %arg0, %c0_i32 : i32, i32
  }
  func.func @transform_1(%arg0: i32) -> (i32, i32) {
    %c0_i32 = arith.constant 0 : i32
    %c0_i32_0 = arith.constant 0 : i32
    %c0_i32_1 = arith.constant 0 : i32
    return %c0_i32, %c0_i32_0 : i32, i32
  }
  func.func @transform_2(%arg0: i32) -> (i32, i32) {
    %c0_i32 = arith.constant 0 : i32
    %c0_i32_0 = arith.constant 0 : i32
    %c0_i32_1 = arith.constant 0 : i32
    return %c0_i32, %c0_i32_0 : i32, i32
  }
  func.func @transform_3(%arg0: i32) -> (i32, i32) {
    %c0_i32 = arith.constant 0 : i32
    %c0_i32_0 = arith.constant 0 : i32
    %c0_i32_1 = arith.constant 0 : i32
    return %c0_i32, %c0_i32_0 : i32, i32
  }
  func.func @transform_4(%arg0: i32) -> (i32, i32) {
    %c0_i32 = arith.constant 0 : i32
    %c0_i32_0 = arith.constant 0 : i32
    %c0_i32_1 = arith.constant 0 : i32
    return %c0_i32, %c0_i32_0 : i32, i32
  }
  func.func @transform_5(%arg0: i32) -> (i32, i32) {
    %c0_i32 = arith.constant 0 : i32
    %c0_i32_0 = arith.constant 0 : i32
    return %c0_i32, %arg0 : i32, i32
  }
}

</mosaic_0001>

<bundles_post_ra>
// kernel: tpu_custom_call.1
= control target key start
LH: loop header
LB: loop body
LE: loop exit
PB: predicated region body
PF: predicated region fallthrough
CT: control target
= control target key end

     0   :  { %10 = vsyncpa [#allocation3], 0  ;;  %s393_s0 = inlined_call_operand.vmem [shape: f32[8,48], index: 0, kind: input, shape index: {}]   ;;  %s394_s1 = inlined_call_operand.hbm [shape: f32[48,128], index: 1, kind: input, shape index: {}]   ;;  %s395_s2 = inlined_call_operand.vmem [shape: f32[1,128], index: 2, kind: input, shape index: {}]   ;;  %s396_s3 = inlined_call_operand.hbm [shape: f32[8,128], index: 3, kind: input, shape index: {}]   ;;  %s397_s4 = inlined_call_operand.vmem [shape: f32[8,1], index: 4, kind: input, shape index: {}]   ;;  %s398_s5 = inlined_call_operand.hbm [shape: f32[8,8], index: 5, kind: output, shape index: {}]  }
   0x1   :  { %11 = vsyncpa [#allocation6], 0 }
   0x2   :  { %12 = vsyncpa [#allocation4], 0  ;;  %s337_s18 = smov [#allocation2]  }
   0x3   :  { %s20_s19 = sshll.u32 %s337_s18, 4  ;;  %s21_s19 = int_to_ptr.vmem [resolvable:$true] %s20_s19 }
   0x4   :  { %s279_s20 = scalar_lea.vmem %s21_s19, 768  ;;  %p284_p1 = scmp.lt.s32.totalorder %s21_s19, %s21_s19 }
   0x5   :  { %p280_p0 = scmp.ne.s32.totalorder %s21_s19, %s279_s20  ;;  %p285_p2 = scmp.lt.s32.totalorder %s279_s20, %s279_s20 }
   0x7   :  { %p286_p3 = por %p285_p2, %p284_p1 }
   0x9   :  { %p287_p4 = pnand %p286_p3, %p280_p0 }
   0xb   :  { %290 = shalt.err (!%p287_p4)
}
   0xc   :  { %s338_s21 = smov 128   ;;  %s339_s22 = smov 8  }
   0xd   :  { %26 = dma.hbm_to_vmem [thread:$0]  %s394_s1, 768, %s21_s19, [#allocation3], %s338_s21, %s338_s21, %s339_s22  }
   0xe   :  { %s340_s25 = smov [#allocation5]  }
   0xf   :  { %s35_s26 = sshll.u32 %s340_s25, 4  ;;  %s36_s26 = int_to_ptr.vmem [resolvable:$true] %s35_s26 }
  0x10   :  { %s299_s27 = scalar_lea.vmem %s36_s26, 128  ;;  %p304_p6 = scmp.lt.s32.totalorder %s36_s26, %s36_s26 }
  0x11   :  { %p300_p5 = scmp.ne.s32.totalorder %s36_s26, %s299_s27  ;;  %p305_p7 = scmp.lt.s32.totalorder %s299_s27, %s299_s27 }
  0x13   :  { %p306_p8 = por %p305_p7, %p304_p6 }
  0x15   :  { %p307_p9 = pnand %p306_p8, %p300_p5 }
  0x17   :  { %310 = shalt.err (!%p307_p9)
}
  0x18   :  { %38 = dma.hbm_to_vmem [thread:$0]  %s396_s3, 128, %s36_s26, [#allocation6]  }
  0x19   :  { %331 = dma.done.wait [#allocation3], 768  }
  0x1a   :  { %332 = vsyncadd [#allocation3], 4294966528 }
  0x1b   :  { %333 = dma.done.wait [#allocation6], 128  }
  0x1c   :  { %334 = vsyncadd [#allocation6], 4294967168  ;;  %v341_v0 = vmov 0.0   ;;  %vm342_vm0 = vmmov 0   ;;  %v53_v1 = vld [vmem:[#allocation2 + $0x28] sm:$0xff]  ;;  %v52_v2 = vld [vmem:[#allocation2 + $0x20] sm:$0xff] }
  0x1d   :  { %242 = vmatprep.subr.mxu0 %v341_v0  ;;  %254 = vmatprep.mubr.msk.f32.mxu0 %vm342_vm0, %v341_v0  ;;  %v51_v3 = vld [vmem:[#allocation2 + $0x18] sm:$0xff]  ;;  %v50_v4 = vld [vmem:[#allocation2 + $0x10] sm:$0xff]  ;;  %v49_v5 = vld [vmem:[#allocation2 + $0x8] sm:$0xff]  ;;  %vm61_vm1 = vcmask 392192   ;;  %v343_v9 = vmov 0   ;;  %vm213_vm2 = vcmask 64512  }
  0x1e   :  { %257 = vmatprep.subr.mxu1 %v341_v0  ;;  %259 = vmatprep.mubr.msk.f32.mxu1 %vm342_vm0, %v341_v0  ;;  %v48_v6 = vld [vmem:[#allocation2] sm:$0xff]  ;;  %v136_v15 = vld [vmem:[#allocation5] sm:$0xff] }
  0x1f   :  { %243 = vmatpush3.msra.mxu0 %v53_v1  ;;  %v47_v7 = vld [vmem:[%s393_s0] sm:$0xff]  ;;  %270 = vset.pattern.permute.xlu0 %v343_v9  ;;  %s344_s0 = smov [#allocation7]  }
  0x20   :  { %244 = vmatprep.subr.mxu0 %v341_v0  ;;  %v137_v8 = vld [vmem:[%s397_s4] sm:$0xff]  ;;  %s221_s9 = sshll.u32 %s344_s0, 4  ;;  %s222_s9 = int_to_ptr.vmem [resolvable:$true] %s221_s9 }
  0x21   :  { %245 = vmatpush3.msra.mxu0 %v52_v2  ;;  %140 = vperm.xlu0 %270, %v137_v8   ;;  %v231_v10 = vld [vmem:[%s395_s2] ss:$0 sm:$0xff]  ;;  %s311_s4 = scalar_lea.vmem %s222_s9, 128  ;;  %p316_p11 = scmp.lt.s32.totalorder %s222_s9, %s222_s9 }
  0x22   :  { %246 = vmatprep.subr.mxu0 %v341_v0  ;;  %p312_p10 = scmp.ne.s32.totalorder %s222_s9, %s311_s4  ;;  %p317_p12 = scmp.lt.s32.totalorder %s311_s4, %s311_s4 }
  0x23   :  { %247 = vmatpush3.msra.mxu0 %v51_v3 }
  0x24   :  { %248 = vmatprep.subr.mxu0 %v341_v0  ;;  %p318_p13 = por %p317_p12, %p316_p11 }
  0x25   :  { %249 = vmatpush3.msra.mxu0 %v50_v4 }
  0x26   :  { %250 = vmatprep.subr.mxu0 %v341_v0  ;;  %p319_p0 = pnand %p318_p13, %p312_p10 }
  0x27   :  { %251 = vmatpush3.msra.mxu0 %v49_v5 }
  0x28   :  { %252 = vmatprep.subr.mxu0 %v341_v0 }
  0x29   :  { %253 = vmatpush3.msra.mxu0 %v48_v6 }
  0x2a   :  { %255 = vmatmul.mubr.msk.f32.vlgmr.msra.gmra.mxu0 %vm61_vm1, %v47_v7 }
  0x9c   :  { %v141_v16 = vpop.permute.xlu0 %140 }
  0xea   :  { %v131_v11 = vpop.f32.mrf.mxu0 }
  0xeb   :  { %v132_v12 = vadd.f32 %v231_v10, %v131_v11 }
  0xec   :  { %v256_v13 = vpop.f32.mrf.mxu0 }
  0xed   :  { %v135_v14 = vmax.f32 %v132_v12, 0.0 }
  0xef   :  { %258 = vmatpush3.xpose.msra.mxu1 %v135_v14 }
  0xf2   :  { %260 = vmatmul.mubr.f32.vlgmr.msra.gmra.mxu1 %v136_v15 }
 0x1b2   :  { %v209_v17 = vpop.f32.mrf.mxu1 }
 0x1b3   :  { %v210_v18 = vadd.f32 %v209_v17, %v141_v16 }
 0x1b4   :  { %v261_v19 = vpop.f32.mrf.mxu1 }
 0x1b5   :  { %214 = vst.msk [vmem:[#allocation7] sm:$0xff] %vm213_vm2, %v210_v18 }
 0x1b6   :  { %322 = shalt.err (!%p319_p0)
}
 0x1b7   :  { %224 = dma.vmem_to_hbm [thread:$0]  %s222_s9, 128, %s398_s5, [#allocation4]  }
 0x1b8   :  { %335 = dma.done.wait [#allocation4], 128  }
 0x1b9   :  { %336 = vsyncadd [#allocation4], 4294967168 }
 0x1ba   :  { %228 = vsyncpa [#allocation3], 1 }
 0x1bb   :  { %229 = vsyncpa [#allocation6], 1 }
 0x1bc   :  { %230 = vsyncpa [#allocation4], 1 }

</bundles_post_ra>
